<compile_context>
chip_gen: v6e
topology: v6e:2x2x1
jax: 0.10.0
libtpu: 0.0.40
codegen_flags: <defaults>
</compile_context>

<pallas_src>
import jax
import jax.numpy as jnp
import numpy as np
from jax import lax
from jax.experimental import pallas as pl
from jax.experimental.pallas import tpu as pltpu

C_IN, HIN, WIN = 4, 16, 16
C1, C2 = 8, 8
EMB = 32
HID = 32
HPAD = 128          # each GRU gate padded to one full 128-lane tile
NUM_CLASSES = 5

VMEM = pltpu.MemorySpace.VMEM


# ----------------------------------------------------------------------------
# Pallas kernels
# ----------------------------------------------------------------------------
def _convT_kernel(w_ref, x_ref, b_ref, o_ref):
    # o = relu(W @ X + b)   W:(C_out, K)  X:(K, M)  b:(C_out, 1)  o:(C_out, M)
    # Transposed form keeps M (= N*OH*OW, a multiple of 128) on lanes -> lane-dense store.
    y = jnp.dot(w_ref[...], x_ref[...], preferred_element_type=jnp.float32)
    o_ref[...] = jnp.maximum(y + b_ref[...], 0.0)


def pallas_convT(w, x, b):
    """relu(w @ x + b[:, None]); w:(C_out,K), x:(K,M) -> (C_out, M). Whole problem fits
    VMEM at these shapes; for large M one would tile M with a 'parallel' grid axis."""
    C_out = w.shape[0]
    M = x.shape[1]
    return pl.pallas_call(
        _convT_kernel,
        out_shape=jax.ShapeDtypeStruct((C_out, M), jnp.float32),
        in_specs=[pl.BlockSpec(memory_space=VMEM)] * 3,
        out_specs=pl.BlockSpec(memory_space=VMEM),
    )(w, x, b.reshape(C_out, 1))


def _gru_head_kernel(lens_ref, feats_ref, h0_ref, we_ref, be_ref,
                     wih_ref, bih_ref, whh_ref, bhh_ref, cw_ref, cb_ref,
                     y_ref, h_ref):
    """Fused: embedding(Linear+ReLU) -> 1-layer GRU with packed-seq mask -> classifier.

    feats: (T, B, 128) flattened conv features (PyTorch NCHW-flatten order)
    All GRU gate weights/biases are zero-padded so each gate occupies lanes
    [g*128, g*128+HID) of a 3*128-wide block; h is carried as (B, 128) with zero pad.
    """
    T = feats_ref.shape[0]
    lens = lens_ref[...]                                   # (B, 1) int32

    def step(t, h):
        f_t = feats_ref[t]                                 # (B, 128) leading-dim index
        e_t = jnp.maximum(
            jnp.dot(f_t, we_ref[...], preferred_element_type=jnp.float32)
            + be_ref[...], 0.0)                            # (B, EMB)
        gi = jnp.dot(e_t, wih_ref[...],
                     preferred_element_type=jnp.float32) + bih_ref[...]   # (B, 384)
        gh = jnp.dot(h, whh_ref[...],
                     preferred_element_type=jnp.float32) + bhh_ref[...]   # (B, 384)
        # gate slices fall on 128-lane boundaries -> no cross-lane relayout
        r = jax.nn.sigmoid(gi[:, 0 * HPAD:1 * HPAD] + gh[:, 0 * HPAD:1 * HPAD])
        z = jax.nn.sigmoid(gi[:, 1 * HPAD:2 * HPAD] + gh[:, 1 * HPAD:2 * HPAD])
        n = jnp.tanh(gi[:, 2 * HPAD:3 * HPAD] + r * gh[:, 2 * HPAD:3 * HPAD])
        h_new = (1.0 - z) * n + z * h
        # packed-sequence semantics: stop updating once t >= length(b)
        return jnp.where(t < lens, h_new, h)

    # TODO(synk): could bound the loop at max(lens) via SMEM scalar prefetch; with
    # T == max(lens) here the masked tail is empty so we keep the static unrolled loop.
    h_last = lax.fori_loop(0, T, step, h0_ref[...], unroll=True)

    h_ref[...] = h_last                                    # (B, 128), pad lanes are 0
    y_ref[...] = (jnp.dot(h_last, cw_ref[...], preferred_element_type=jnp.float32)
                  + cb_ref[...])                           # fused classifier


def pallas_gru_head(lens, feats, h0, we, be, wih, bih, whh, bhh, cw, cb):
    T, B, _ = feats.shape
    return pl.pallas_call(
        _gru_head_kernel,
        out_shape=(jax.ShapeDtypeStruct((B, NUM_CLASSES), jnp.float32),
                   jax.ShapeDtypeStruct((B, HPAD), jnp.float32)),
        in_specs=[pl.BlockSpec(memory_space=VMEM)] * 11,
        out_specs=(pl.BlockSpec(memory_space=VMEM),
                   pl.BlockSpec(memory_space=VMEM)),
    )(lens, feats, h0, we, be, wih, bih, whh, bhh, cw, cb)


# ----------------------------------------------------------------------------
# Host glue: channels-major im2col (conv matmul hot path stays in Pallas)
# ----------------------------------------------------------------------------
def _im2col_T(x_cnhw, kh, kw, stride, pad):
    """x: (C, N, H, W) -> (C*kh*kw, N*OH*OW); rows ordered (c, ki, kj) to match
    OIHW weight flattening, cols ordered (n, oh, ow)."""
    C, N, H, W = x_cnhw.shape
    xp = jnp.pad(x_cnhw, ((0, 0), (0, 0), (pad, pad), (pad, pad)))
    OH = (H + 2 * pad - kh) // stride + 1
    OW = (W + 2 * pad - kw) // stride + 1
    slabs = [xp[:, :, ki:ki + stride * OH:stride, kj:kj + stride * OW:stride]
             for ki in range(kh) for kj in range(kw)]
    p = jnp.stack(slabs, axis=1)                           # (C, kh*kw, N, OH, OW)
    return p.reshape(C * kh * kw, N * OH * OW), OH, OW
    # TODO(synk): a fully in-kernel shifted-matmul conv would avoid the 9x patch blowup;
    # at these tiny shapes the host-side im2col is not the bottleneck.


def _pad_gates_cols(w_t):
    """(K, 3*HID) -> (K, 3*HPAD): each gate's HID columns start at a 128-lane boundary."""
    K = w_t.shape[0]
    out = jnp.zeros((K, 3 * HPAD), jnp.float32)
    for g in range(3):
        out = out.at[:, g * HPAD:g * HPAD + HID].set(w_t[:, g * HID:(g + 1) * HID])
    return out


# ----------------------------------------------------------------------------
# Forward pass (== CRNN_Classifier.forward, returning (y_pred, h_n))
# ----------------------------------------------------------------------------
def crnn_forward(params, x, x_lens):
    B, T = x.shape[0], x.shape[1]
    BT = B * T

    # --- ConvolutionalEncoder1D.stack (channels-major, lane-dense outputs) ---
    frames = x.reshape(BT, C_IN, HIN, WIN).transpose(1, 0, 2, 3)      # (C, N, H, W)
    p1, oh1, ow1 = _im2col_T(frames, 3, 3, 2, 1)                      # (36, BT*64)
    y1 = pallas_convT(params["conv1_w"].reshape(C1, -1), p1, params["conv1_b"])

    y1 = y1.reshape(C1, BT, oh1, ow1)                                 # stays channels-major
    p2, oh2, ow2 = _im2col_T(y1, 3, 3, 2, 1)                          # (72, BT*16)
    y2 = pallas_convT(params["conv2_w"].reshape(C2, -1), p2, params["conv2_b"])

    # per-frame features in PyTorch NCHW-flatten order (c, h, w); final shape (T, B, 128)
    feats = (y2.reshape(C2, BT, oh2 * ow2).transpose(1, 0, 2)
               .reshape(BT, C2 * oh2 * ow2)
               .reshape(B, T, -1).transpose(1, 0, 2))

    # --- fused embedding + GRU (packed semantics) + classifier ---
    lens = x_lens.astype(jnp.int32).reshape(B, 1)
    h0 = jnp.zeros((B, HPAD), jnp.float32).at[:, :HID].set(
        jnp.broadcast_to(params["init_hidden"][0], (B, HID)))
    we = params["emb_w"].T                                            # (128, EMB)
    be = params["emb_b"].reshape(1, EMB)
    wih = _pad_gates_cols(params["wih"].T)                            # (EMB, 3*HPAD)
    bih = _pad_gates_cols(params["bih"].reshape(1, -1))
    whh = jnp.zeros((HPAD, 3 * HPAD), jnp.float32).at[:HID].set(
        _pad_gates_cols(params["whh"].T))
    bhh = _pad_gates_cols(params["bhh"].reshape(1, -1))
    cw = jnp.zeros((HPAD, NUM_CLASSES), jnp.float32).at[:HID].set(params["clf_w"].T)
    cb = params["clf_b"].reshape(1, NUM_CLASSES)

    y_pred, h_last_p = pallas_gru_head(lens, feats, h0, we, be,
                                       wih, bih, whh, bhh, cw, cb)
    h_n = h_last_p[:, :HID][None]                                     # (1, B, HID)
    return y_pred, h_n
    # TODO(synk): nn.CrossEntropyLoss is only used at train time, not in forward().


# ----------------------------------------------------------------------------
# Pure-JAX reference (for numeric verification)
# ----------------------------------------------------------------------------
def reference_forward(params, x, x_lens):
    B, T = x.shape[0], x.shape[1]
    hp = jax.lax.Precision.HIGHEST
    frames = x.reshape(B * T, C_IN, HIN, WIN)

    def conv(z, w, b):
        out = jax.lax.conv_general_dilated(
            z, w, (2, 2), [(1, 1), (1, 1)],
            dimension_numbers=("NCHW", "OIHW", "NCHW"), precision=hp)
        return jax.nn.relu(out + b[None, :, None, None])

    y = conv(frames, params["conv1_w"], params["conv1_b"])
    y = conv(y, params["conv2_w"], params["conv2_b"])
    flat = y.reshape(B * T, -1)
    emb = jax.nn.relu(jnp.dot(flat, params["emb_w"].T, precision=hp)
                      + params["emb_b"])

    x_tbe = emb.reshape(B, T, EMB).transpose(1, 0, 2)
    h0 = jnp.broadcast_to(params["init_hidden"][0], (B, HID))
    wih, whh = params["wih"].T, params["whh"].T
    bih, bhh = params["bih"], params["bhh"]
    lens = x_lens.astype(jnp.int32)

    def step(h, inp):
        x_t, t = inp
        gi = jnp.dot(x_t, wih, precision=hp) + bih
        gh = jnp.dot(h, whh, precision=hp) + bhh
        i_r, i_z, i_n = jnp.split(gi, 3, axis=-1)
        h_r, h_z, h_n = jnp.split(gh, 3, axis=-1)
        r = jax.nn.sigmoid(i_r + h_r)
        z = jax.nn.sigmoid(i_z + h_z)
        n = jnp.tanh(i_n + r * h_n)
        h_new = (1.0 - z) * n + z * h
        h = jnp.where((t < lens)[:, None], h_new, h)
        return h, None

    h_last, _ = jax.lax.scan(step, h0, (x_tbe, jnp.arange(T)))
    y_pred = jnp.dot(h_last, params["clf_w"].T, precision=hp) + params["clf_b"]
    return y_pred, h_last[None]


# ----------------------------------------------------------------------------
def make_params(key):
    ks = jax.random.split(key, 13)

    def init(k, shape, scale=0.1):
        return scale * jax.random.normal(k, shape, dtype=jnp.float32)

    return dict(
        conv1_w=init(ks[0], (C1, C_IN, 3, 3)),
        conv1_b=init(ks[1], (C1,)),
        conv2_w=init(ks[2], (C2, C1, 3, 3)),
        conv2_b=init(ks[3], (C2,)),
        emb_w=init(ks[4], (EMB, C2 * 4 * 4)),
        emb_b=init(ks[5], (EMB,)),
        wih=init(ks[6], (3 * HID, EMB)),     # PyTorch GRU weight_ih_l0 layout (r,z,n)
        whh=init(ks[7], (3 * HID, HID)),
        bih=init(ks[8], (3 * HID,)),
        bhh=init(ks[9], (3 * HID,)),
        clf_w=init(ks[10], (NUM_CLASSES, HID)),
        clf_b=init(ks[11], (NUM_CLASSES,)),
        init_hidden=init(ks[12], (1, HID), scale=1.0),   # nn.Parameter(randn(L, H))
    )


if __name__ == "__main__":
    key = jax.random.PRNGKey(0)
    pkey, xkey = jax.random.split(key)
    params = make_params(pkey)

    B, T = 2, 8
    x = jax.random.normal(xkey, (B, T, C_IN, HIN, WIN), dtype=jnp.float32)
    x_lens = jnp.array([8, 5], dtype=jnp.int32)   # variable-length (packed) sequences

    y_pred, h_n = crnn_forward(params, x, x_lens)
    jax.block_until_ready((y_pred, h_n))

    y_ref, h_ref = reference_forward(params, x, x_lens)
    assert y_pred.shape == (B, NUM_CLASSES) and h_n.shape == (1, B, HID)
    assert np.allclose(np.asarray(y_pred), np.asarray(y_ref), rtol=1e-2, atol=1e-2)
    assert np.allclose(np.asarray(h_n), np.asarray(h_ref), rtol=1e-2, atol=1e-2)

    print("KERNEL_OK")
</pallas_src>

<mosaic_0001>
module attributes {stable_mosaic.version = 11 : i64} {
  func.func @_convT_kernel(%arg0: memref<8x36xf32, #tpu.memory_space<vmem>>, %arg1: memref<36x1024xf32, #tpu.memory_space<vmem>>, %arg2: memref<8x1xf32, #tpu.memory_space<vmem>>, %arg3: memref<8x1024xf32, #tpu.memory_space<vmem>>) attributes {dimension_semantics = [], scalar_prefetch = 0 : i64, scratch_operands = 0 : i64, tpu.core_type = #tpu.core_type<tc>} {
    %c0 = arith.constant 0 : index
    %c0_0 = arith.constant 0 : index
    %0 = vector.load %arg0[%c0, %c0_0] : memref<8x36xf32, #tpu.memory_space<vmem>>, vector<8x36xf32>
    %c0_1 = arith.constant 0 : index
    %c0_2 = arith.constant 0 : index
    %1 = vector.load %arg1[%c0_1, %c0_2] : memref<36x1024xf32, #tpu.memory_space<vmem>>, vector<36x1024xf32>
    %cst = arith.constant dense<0.000000e+00> : vector<8x1024xf32>
    %2 = tpu.matmul %0, %1, %cst {dimension_numbers = #tpu.dot_dimension_numbers<[1], [0], [0], [1], [0, 0, 1, 1], [], []>} : vector<8x36xf32>, vector<36x1024xf32>, vector<8x1024xf32> -> vector<8x1024xf32>
    %c0_3 = arith.constant 0 : index
    %c0_4 = arith.constant 0 : index
    %3 = vector.load %arg2[%c0_3, %c0_4] : memref<8x1xf32, #tpu.memory_space<vmem>>, vector<8x1xf32>
    %4 = vector.broadcast %3 : vector<8x1xf32> to vector<8x1024xf32>
    %5 = arith.addf %2, %4 : vector<8x1024xf32>
    %cst_5 = arith.constant 0.000000e+00 : f32
    %6 = vector.broadcast %cst_5 : f32 to vector<8x1024xf32>
    %7 = arith.maximumf %5, %6 : vector<8x1024xf32>
    %c0_6 = arith.constant 0 : index
    %c0_7 = arith.constant 0 : index
    %8 = vector.load %arg3[%c0_6, %c0_7] : memref<8x1024xf32, #tpu.memory_space<vmem>>, vector<8x1024xf32>
    tpu.vector_store %arg3[%c0_6, %c0_7], %7 {strides = array<i32>} : memref<8x1024xf32, #tpu.memory_space<vmem>>, vector<8x1024xf32>,
    return
  }
}

</mosaic_0001>

<bundles_post_ra>
// kernel: tpu_custom_call.1
= control target key start
LH: loop header
LB: loop body
LE: loop exit
PB: predicated region body
PF: predicated region fallthrough
CT: control target
= control target key end

     0   :  { %8 = vsyncpa [#allocation3], 0  ;;  %s537_s0 = inlined_call_operand.vmem [shape: f32[8,36], index: 0, kind: input, shape index: {}]   ;;  %s538_s1 = inlined_call_operand.hbm [shape: f32[36,1024], index: 1, kind: input, shape index: {}]   ;;  %s539_s2 = inlined_call_operand.vmem [shape: f32[8,1], index: 2, kind: input, shape index: {}]   ;;  %s540_s3 = inlined_call_operand.hbm [shape: f32[8,1024], index: 3, kind: output, shape index: {}]  }
   0x1   :  { %9 = vsyncpa [#allocation4], 0  ;;  %s483_s12 = smov [#allocation2]  }
   0x2   :  { %s17_s13 = sshll.u32 %s483_s12, 4  ;;  %s18_s13 = int_to_ptr.vmem [resolvable:$true] %s17_s13 }
   0x3   :  { %s447_s14 = scalar_lea.vmem %s18_s13, 5120  ;;  %p452_p1 = scmp.lt.s32.totalorder %s18_s13, %s18_s13 }
   0x4   :  { %p448_p0 = scmp.ne.s32.totalorder %s18_s13, %s447_s14  ;;  %p453_p2 = scmp.lt.s32.totalorder %s447_s14, %s447_s14 }
   0x6   :  { %p454_p3 = por %p453_p2, %p452_p1 }
   0x8   :  { %p455_p4 = pnand %p454_p3, %p448_p0 }
   0xa   :  { %458 = shalt.err (!%p455_p4)
}
   0xb   :  { %s484_s15 = smov 1024   ;;  %s485_s16 = smov 64  }
   0xc   :  { %23 = dma.hbm_to_vmem [thread:$0]  %s538_s1, 5120, %s18_s13, [#allocation3], %s484_s15, %s484_s15, %s485_s16  }
   0xd   :  { %479 = dma.done.wait [#allocation3], 5120  }
   0xe   :  { %480 = vsyncadd [#allocation3], 4294962176  ;;  %v486_v0 = vmov 0.0   ;;  %v487_v1 = vmov 0   ;;  %vm80_vm0 = vcmask 1043456   ;;  %v55_v6 = vld [vmem:[#allocation2 + $0xc8] sm:$0xff] }
   0xf   :  { %169 = vmatprep.mubr.f32.mxu0 %v486_v0  ;;  %240 = vmatprep.mubr.f32.mxu1 %v486_v0  ;;  %v63_v2 = vld [vmem:[#allocation2 + $0x108] sm:$0xf]  ;;  %v65_v3 = vld [vmem:[#allocation2 + $0x118] sm:$0xf]  ;;  %v62_v4 = vld [vmem:[#allocation2 + $0x100] sm:$0xf] }
  0x10   :  { %438 = vset.pattern.permute.xlu0 %v487_v1  ;;  %420 = vmatprep.subr.msk.mxu0 %vm80_vm0, %v63_v2  ;;  %v64_v5 = vld [vmem:[#allocation2 + $0x110] sm:$0xf]  ;;  %v57_v7 = vld [vmem:[#allocation2 + $0xd8] sm:$0xff]  ;;  %v54_v8 = vld [vmem:[#allocation2 + $0xc0] sm:$0xff]  ;;  %vm76_vm1 = vcmask 293888  }
  0x11   :  { %423 = vmatprep.subr.msk.mxu1 %vm80_vm0, %v65_v3  ;;  %421 = vmatpush1.msk.msra.mxu0 %vm80_vm0, %v62_v4  ;;  %v56_v9 = vld [vmem:[#allocation2 + $0xd0] sm:$0xff]  ;;  %v47_v10 = vld [vmem:[#allocation2 + $0x88] sm:$0xff]  ;;  %v49_v11 = vld [vmem:[#allocation2 + $0x98] sm:$0xff] }
  0x12   :  { %424 = vmatpush1.msk.msra.mxu1 %vm80_vm0, %v64_v5  ;;  %129 = vmatprep.subr.mxu0 %v55_v6  ;;  %v46_v12 = vld [vmem:[#allocation2 + $0x80] sm:$0xff]  ;;  %v48_v13 = vld [vmem:[#allocation2 + $0x90] sm:$0xff]  ;;  %v39_v14 = vld [vmem:[#allocation2 + $0x48] sm:$0xff] }
  0x13   :  { %200 = vmatprep.subr.mxu1 %v57_v7  ;;  %130 = vmatpush1.msra.mxu0 %v54_v8  ;;  %v41_v15 = vld [vmem:[#allocation2 + $0x58] sm:$0xff]  ;;  %v38_v16 = vld [vmem:[#allocation2 + $0x40] sm:$0xff]  ;;  %v40_v17 = vld [vmem:[#allocation2 + $0x50] sm:$0xff] }
  0x14   :  { %201 = vmatpush1.msra.mxu1 %v56_v9  ;;  %131 = vmatprep.subr.mxu0 %v47_v10  ;;  %v31_v18 = vld [vmem:[#allocation2 + $0x8] sm:$0xff]  ;;  %v33_v19 = vld [vmem:[#allocation2 + $0x18] sm:$0xff]  ;;  %v30_v20 = vld [vmem:[#allocation2] sm:$0xff] }
  0x15   :  { %202 = vmatprep.subr.mxu1 %v49_v11  ;;  %132 = vmatpush1.msra.mxu0 %v46_v12  ;;  %v32_v21 = vld [vmem:[#allocation2 + $0x10] sm:$0xff]  ;;  %v29_v22 = vld [vmem:[%s537_s0] sm:$0xff]  ;;  %v67_v23 = vld [vmem:[#allocation2 + $0x128] sm:$0xf] }
  0x16   :  { %203 = vmatpush1.msra.mxu1 %v48_v13  ;;  %133 = vmatprep.subr.mxu0 %v39_v14  ;;  %v69_v24 = vld [vmem:[#allocation2 + $0x138] sm:$0xf]  ;;  %v66_v25 = vld [vmem:[#allocation2 + $0x120] sm:$0xf]  ;;  %v68_v26 = vld [vmem:[#allocation2 + $0x130] sm:$0xf] }
  0x17   :  { %204 = vmatprep.subr.mxu1 %v41_v15  ;;  %134 = vmatpush1.msra.mxu0 %v38_v16  ;;  %v59_v27 = vld [vmem:[#allocation2 + $0xe8] sm:$0xff]  ;;  %v61_v28 = vld [vmem:[#allocation2 + $0xf8] sm:$0xff]  ;;  %v58_v29 = vld [vmem:[#allocation2 + $0xe0] sm:$0xff] }
  0x18   :  { %205 = vmatpush1.msra.mxu1 %v40_v17  ;;  %135 = vmatprep.subr.mxu0 %v31_v18  ;;  %v60_v30 = vld [vmem:[#allocation2 + $0xf0] sm:$0xff]  ;;  %v51_v31 = vld [vmem:[#allocation2 + $0xa8] sm:$0xff]  ;;  %v53_v32 = vld [vmem:[#allocation2 + $0xb8] sm:$0xff] }
  0x19   :  { %206 = vmatprep.subr.mxu1 %v33_v19  ;;  %136 = vmatpush1.msra.mxu0 %v30_v20  ;;  %v50_v33 = vld [vmem:[#allocation2 + $0xa0] sm:$0xff]  ;;  %v52_v34 = vld [vmem:[#allocation2 + $0xb0] sm:$0xff]  ;;  %v43_v35 = vld [vmem:[#allocation2 + $0x68] sm:$0xff] }
  0x1a   :  { %207 = vmatpush1.msra.mxu1 %v32_v21  ;;  %422 = vmatmul.mubr.msk.f32.vlgmr.msra.gmra.mxu0 %vm76_vm1, %v29_v22  ;;  %v45_v36 = vld [vmem:[#allocation2 + $0x78] sm:$0xff]  ;;  %v42_v37 = vld [vmem:[#allocation2 + $0x60] sm:$0xff]  ;;  %v44_v38 = vld [vmem:[#allocation2 + $0x70] sm:$0xff] }
  0x1b   :  { %425 = vmatmul.mubr.msk.f32.vlgmr.msra.gmra.mxu1 %vm76_vm1, %v29_v22  ;;  %426 = vmatprep.subr.msk.mxu0 %vm80_vm0, %v67_v23  ;;  %v35_v39 = vld [vmem:[#allocation2 + $0x28] sm:$0xff]  ;;  %v37_v40 = vld [vmem:[#allocation2 + $0x38] sm:$0xff]  ;;  %v34_v41 = vld [vmem:[#allocation2 + $0x20] sm:$0xff] }
  0x1c   :  { %429 = vmatprep.subr.msk.mxu1 %vm80_vm0, %v69_v24  ;;  %427 = vmatpush1.msk.msra.mxu0 %vm80_vm0, %v66_v25  ;;  %v36_v42 = vld [vmem:[#allocation2 + $0x30] sm:$0xff]  ;;  %v70_v43 = vld [vmem:[%s539_s2] sm:$0xff]  ;;  %s488_s2 = smov [#allocation5]  }
  0x1d   :  { %430 = vmatpush1.msk.msra.mxu1 %vm80_vm0, %v68_v26  ;;  %271 = vmatprep.subr.mxu0 %v59_v27  ;;  %s411_s21 = sshll.u32 %s488_s2, 4  ;;  %s412_s21 = int_to_ptr.vmem [resolvable:$true] %s411_s21 }
  0x1e   :  { %342 = vmatprep.subr.mxu1 %v61_v28  ;;  %272 = vmatpush1.msra.mxu0 %v58_v29  ;;  %s459_s22 = scalar_lea.vmem %s412_s21, 1024  ;;  %p464_p6 = scmp.lt.s32.totalorder %s412_s21, %s412_s21 }
  0x1f   :  { %343 = vmatpush1.msra.mxu1 %v60_v30  ;;  %273 = vmatprep.subr.mxu0 %v51_v31  ;;  %p460_p5 = scmp.ne.s32.totalorder %s412_s21, %s459_s22  ;;  %p465_p7 = scmp.lt.s32.totalorder %s459_s22, %s459_s22 }
  0x20   :  { %344 = vmatprep.subr.mxu1 %v53_v32  ;;  %274 = vmatpush1.msra.mxu0 %v50_v33 }
  0x21   :  { %345 = vmatpush1.msra.mxu1 %v52_v34  ;;  %275 = vmatprep.subr.mxu0 %v43_v35  ;;  %p466_p8 = por %p465_p7, %p464_p6 }
  0x22   :  { %346 = vmatprep.subr.mxu1 %v45_v36  ;;  %276 = vmatpush1.msra.mxu0 %v42_v37 }
  0x23   :  { %347 = vmatpush1.msra.mxu1 %v44_v38  ;;  %277 = vmatprep.subr.mxu0 %v35_v39  ;;  %p467_p9 = pnand %p466_p8, %p460_p5 }
  0x24   :  { %348 = vmatprep.subr.mxu1 %v37_v40  ;;  %278 = vmatpush1.msra.mxu0 %v34_v41 }
  0x25   :  { %311 = vmatprep.mubr.f32.mxu0 %v486_v0  ;;  %349 = vmatpush1.msra.mxu1 %v36_v42 }
  0x26   :  { %382 = vmatprep.mubr.f32.mxu1 %v486_v0  ;;  %428 = vmatmul.mubr.msk.f32.vlgmr.msra.gmra.mxu0 %vm76_vm1, %v29_v22 }
  0x27   :  { %431 = vmatmul.mubr.msk.f32.vlgmr.msra.gmra.mxu1 %vm76_vm1, %v29_v22  ;;  %73 = vperm.xlu0 %438, %v70_v43  }
  0xa2   :  { %v74_v44 = vpop.permute.xlu0 %73 }
  0xda   :  { %v171_v45 = vpop.f32.mrf.mxu0 }
  0xdb   :  { %v242_v46 = vpop.f32.mrf.mxu1  ;;  %v172_v47 = vadd.f32 %v171_v45, %v74_v44 }
  0xdc   :  { %v243_v48 = vadd.f32 %v242_v46, %v74_v44  ;;  %v173_v49 = vpop.f32.mrf.mxu0 }
  0xdd   :  { %v244_v50 = vpop.f32.mrf.mxu1  ;;  %v389_v51 = vmax.f32 %v172_v47, 0.0  ;;  %v174_v53 = vadd.f32 %v173_v49, %v74_v44 }
  0xde   :  { %v391_v52 = vmax.f32 %v243_v48, 0.0  ;;  %v245_v54 = vadd.f32 %v244_v50, %v74_v44 }
  0xdf   :  { %397 = vst [vmem:[#allocation5] sm:$0xff] %v389_v51  ;;  %v390_v55 = vmax.f32 %v174_v53, 0.0 }
  0xe0   :  { %399 = vst [vmem:[#allocation5 + $0x10] sm:$0xff] %v391_v52  ;;  %v392_v56 = vmax.f32 %v245_v54, 0.0 }
  0xe1   :  { %398 = vst [vmem:[#allocation5 + $0x8] sm:$0xff] %v390_v55 }
  0xe2   :  { %400 = vst [vmem:[#allocation5 + $0x18] sm:$0xff] %v392_v56 }
  0xe6   :  { %v313_v57 = vpop.f32.mrf.mxu0 }
  0xe7   :  { %v384_v58 = vpop.f32.mrf.mxu1  ;;  %v314_v59 = vadd.f32 %v313_v57, %v74_v44 }
  0xe8   :  { %v385_v60 = vadd.f32 %v384_v58, %v74_v44  ;;  %v315_v61 = vpop.f32.mrf.mxu0 }
  0xe9   :  { %v386_v62 = vpop.f32.mrf.mxu1  ;;  %v393_v63 = vmax.f32 %v314_v59, 0.0  ;;  %v316_v1 = vadd.f32 %v315_v61, %v74_v44 }
  0xea   :  { %v395_v0 = vmax.f32 %v385_v60, 0.0  ;;  %v387_v2 = vadd.f32 %v386_v62, %v74_v44 }
  0xeb   :  { %401 = vst [vmem:[#allocation5 + $0x20] sm:$0xff] %v393_v63  ;;  %v394_v3 = vmax.f32 %v316_v1, 0.0 }
  0xec   :  { %403 = vst [vmem:[#allocation5 + $0x30] sm:$0xff] %v395_v0  ;;  %v396_v4 = vmax.f32 %v387_v2, 0.0 }
  0xed   :  { %402 = vst [vmem:[#allocation5 + $0x28] sm:$0xff] %v394_v3 }
  0xee   :  { %404 = vst [vmem:[#allocation5 + $0x38] sm:$0xff] %v396_v4 }
  0xef   :  { %470 = shalt.err (!%p467_p9)
}
  0xf0   :  { %414 = dma.vmem_to_hbm [thread:$0]  %s412_s21, 1024, %s540_s3, [#allocation4]  }
  0xf1   :  { %481 = dma.done.wait [#allocation4], 1024  }
  0xf2   :  { %482 = vsyncadd [#allocation4], 4294966272 }
  0xf3   :  { %418 = vsyncpa [#allocation3], 1 }
  0xf4   :  { %419 = vsyncpa [#allocation4], 1 }

</bundles_post_ra>
